<compile_context>
chip_gen: v6e
topology: v6e:2x2x1
jax: 0.10.0
libtpu: 0.0.40
codegen_flags: <defaults>
</compile_context>

<pallas_src>
import jax
import jax.numpy as jnp
from jax import lax
from jax.experimental import pallas as pl
from jax.experimental.pallas import tpu as pltpu


def _round_up(x, m):
    return (x + m - 1) // m * m


# --------------------------------------------------------------------------
# Kernel A (recompute path, pass 1): conv matmul -> per-tile BN partial stats
# only.  Nothing but the tiny (2, Coutp) stats block is written to HBM.
# --------------------------------------------------------------------------
def _stats_kernel(p_ref, w_ref, ps_ref):
    # p_ref : (TM, Kp) bf16, w_ref : (Kp, Coutp) bf16, ps_ref : (1, 2, Coutp) f32
    acc = jnp.dot(p_ref[...], w_ref[...], preferred_element_type=jnp.float32)
    ps_ref[0, 0:1, :] = jnp.sum(acc, axis=0, keepdims=True)
    ps_ref[0, 1:2, :] = jnp.sum(acc * acc, axis=0, keepdims=True)


# --------------------------------------------------------------------------
# Kernel B (store path, pass 1): conv matmul -> f32 conv tile + partial stats.
# --------------------------------------------------------------------------
def _conv_stats_kernel(p_ref, w_ref, conv_ref, ps_ref):
    acc = jnp.dot(p_ref[...], w_ref[...], preferred_element_type=jnp.float32)
    conv_ref[...] = acc
    ps_ref[0, 0:1, :] = jnp.sum(acc, axis=0, keepdims=True)
    ps_ref[0, 1:2, :] = jnp.sum(acc * acc, axis=0, keepdims=True)


# --------------------------------------------------------------------------
# Kernel C (recompute path, pass 2): recompute the conv matmul and fuse the
# BN affine; emits the final f32 lane-dense output tile.
# --------------------------------------------------------------------------
def _conv_affine_kernel(p_ref, w_ref, scale_ref, shift_ref, o_ref):
    acc = jnp.dot(p_ref[...], w_ref[...], preferred_element_type=jnp.float32)
    o_ref[...] = acc * scale_ref[...] + shift_ref[...]


def basic_conv2d(x_nchw, weight_oihw, gamma, beta,
                 *, stride=1, padding=0, dilation=1, eps=1e-5,
                 block_m=1024, mxu_dtype=jnp.bfloat16):
    """PyTorch-equivalent BasicConv2d forward. x_nchw: [N, Cin, H, W]."""
    N, Cin, H, W = x_nchw.shape
    Cout, _, KH, KW = weight_oihw.shape
    Ho = (H + 2 * padding - dilation * (KH - 1) - 1) // stride + 1
    Wo = (W + 2 * padding - dilation * (KW - 1) - 1) // stride + 1

    M = N * Ho * Wo
    K = KH * KW * Cin
    Kp = _round_up(K, 128)
    Coutp = _round_up(Cout, 128)

    # ---- VMEM budget & adaptive M tile --------------------------------
    vmem_limit = 48 * 1024 * 1024  # <= v7x 64 MiB/TC; plenty of room on v5e/v6e

    def _footprint(tm):  # double-buffered per-step VMEM estimate (bytes)
        return (2 * tm * Kp * 2          # patch tile (bf16), double-buffered
                + 2 * tm * Coutp * 4     # conv / output tile (f32)
                + 2 * Kp * Coutp * 2     # weight (constant index -> fetched once)
                + 8 * Coutp * 4)         # stats / scale / shift

    if M <= 256:
        TM = _round_up(M, 8)
    else:
        TM = block_m
        # shrink only if the tile blows the VMEM budget, or if it would leave
        # fewer than 2 grid steps (would idle one v7x TensorCore).
        while TM > 256 and (_footprint(TM) + (8 << 20) > vmem_limit
                            or pl.cdiv(M, TM) < 2):
            TM //= 2
    Mp = _round_up(M, TM)
    G = Mp // TM

    # Recompute the matmul in pass 2 when re-reading the bf16 patches is
    # cheaper than round-tripping the f32 conv intermediate through HBM.
    recompute = (2 * Kp) <= (4 * Coutp)

    # ---- glue: NCHW -> NHWC (bf16), zero pad, im2col, pad to HW tiles ----
    x_nhwc = jnp.transpose(x_nchw, (0, 2, 3, 1)).astype(mxu_dtype)
    xp = jnp.pad(x_nhwc, ((0, 0), (padding, padding), (padding, padding), (0, 0)))
    taps = []
    for kh in range(KH):
        for kw in range(KW):
            h0 = kh * dilation
            w0 = kw * dilation
            taps.append(lax.slice(
                xp,
                (0, h0, w0, 0),
                (N, h0 + (Ho - 1) * stride + 1, w0 + (Wo - 1) * stride + 1, Cin),
                (1, stride, stride, 1)))                     # (N, Ho, Wo, Cin)
    patches = jnp.concatenate(taps, axis=-1).reshape(M, K)   # (M, KH*KW*Cin) bf16
    patches = jnp.pad(patches, ((0, Mp - M), (0, Kp - K)))

    # weight (Cout, Cin, KH, KW) -> (KH, KW, Cin, Cout) -> (K, Cout); matches
    # the (kh, kw, cin) ordering of the im2col concatenation above.
    w_mat = jnp.transpose(weight_oihw, (2, 3, 1, 0)).reshape(K, Cout).astype(mxu_dtype)
    w_mat = jnp.pad(w_mat, ((0, Kp - K), (0, Coutp - Cout)))

    # ---- shared specs ----
    patch_spec = pl.BlockSpec((TM, Kp), lambda i: (i, 0))
    w_spec = pl.BlockSpec((Kp, Coutp), lambda i: (0, 0))
    conv_spec = pl.BlockSpec((TM, Coutp), lambda i: (i, 0))
    stats_spec = pl.BlockSpec((1, 2, Coutp), lambda i: (i, 0, 0))
    vec_spec = pl.BlockSpec((1, Coutp), lambda i: (0, 0))
    cparams = pltpu.CompilerParams(dimension_semantics=("parallel",),
                                   vmem_limit_bytes=vmem_limit)
    flops_true = 2 * M * K * Cout

    # ---- pass 1 ----
    conv_flat = None
    if recompute:
        pstats = pl.pallas_call(
            _stats_kernel,
            out_shape=jax.ShapeDtypeStruct((G, 2, Coutp), jnp.float32),
            grid_spec=pltpu.PrefetchScalarGridSpec(
                num_scalar_prefetch=0, grid=(G,),
                in_specs=[patch_spec, w_spec],
                out_specs=stats_spec),
            compiler_params=cparams,
            cost_estimate=pl.CostEstimate(
                flops=flops_true, transcendentals=0,
                bytes_accessed=M * K * 2 + K * Cout * 2 + G * 2 * Cout * 4),
        )(patches, w_mat)
    else:
        conv_flat, pstats = pl.pallas_call(
            _conv_stats_kernel,
            out_shape=(jax.ShapeDtypeStruct((Mp, Coutp), jnp.float32),
                       jax.ShapeDtypeStruct((G, 2, Coutp), jnp.float32)),
            grid_spec=pltpu.PrefetchScalarGridSpec(
                num_scalar_prefetch=0, grid=(G,),
                in_specs=[patch_spec, w_spec],
                out_specs=(conv_spec, stats_spec)),
            compiler_params=cparams,
            cost_estimate=pl.CostEstimate(
                flops=flops_true, transcendentals=0,
                bytes_accessed=(M * K * 2 + K * Cout * 2
                                + M * Cout * 4 + G * 2 * Cout * 4)),
        )(patches, w_mat)

    # ---- glue: fold per-tile stats into per-channel scale / shift (f32) ----
    ssum = jnp.sum(pstats, axis=0)                        # (2, Coutp)
    mean = ssum[0] / M                                    # biased stats over N*Ho*Wo
    var = jnp.maximum(ssum[1] / M - mean * mean, 0.0)     # cancellation guard
    inv = lax.rsqrt(var + eps)
    gamma_p = jnp.pad(gamma.astype(jnp.float32), (0, Coutp - Cout))
    beta_p = jnp.pad(beta.astype(jnp.float32), (0, Coutp - Cout))
    scale = (gamma_p * inv).reshape(1, Coutp)
    shift = (beta_p - mean * gamma_p * inv).reshape(1, Coutp)

    # ---- pass 2 ----
    if recompute:
        out_flat = pl.pallas_call(
            _conv_affine_kernel,
            out_shape=jax.ShapeDtypeStruct((Mp, Coutp), jnp.float32),
            grid_spec=pltpu.PrefetchScalarGridSpec(
                num_scalar_prefetch=0, grid=(G,),
                in_specs=[patch_spec, w_spec, vec_spec, vec_spec],
                out_specs=conv_spec),
            compiler_params=cparams,
            cost_estimate=pl.CostEstimate(
                flops=flops_true + 2 * M * Cout, transcendentals=0,
                bytes_accessed=(M * K * 2 + K * Cout * 2
                                + 2 * Cout * 4 + M * Cout * 4)),
        )(patches, w_mat, scale, shift)
    else:
        # Broadcast FMA; XLA fuses this into the slice/transpose epilogue
        # below, so the conv tensor makes exactly one more HBM round trip.
        out_flat = conv_flat * scale + shift

    # ---- glue: strip padding, back to NCHW ----
    out = out_flat[:M, :Cout].reshape(N, Ho, Wo, Cout)
    return jnp.transpose(out, (0, 3, 1, 2))


def _reference(x_nchw, weight_oihw, gamma, beta,
               *, stride, padding, dilation, eps, mxu_dtype):
    # Same bf16 rounding of the matmul operands as the kernel, f32 accumulate.
    xq = x_nchw.astype(mxu_dtype).astype(jnp.float32)
    wq = weight_oihw.astype(mxu_dtype).astype(jnp.float32)
    conv = lax.conv_general_dilated(
        xq, wq,
        window_strides=(stride, stride),
        padding=[(padding, padding), (padding, padding)],
        rhs_dilation=(dilation, dilation),
        dimension_numbers=("NCHW", "OIHW", "NCHW"),
        precision=lax.Precision.HIGHEST)
    mean = conv.mean(axis=(0, 2, 3), keepdims=True)
    var = conv.var(axis=(0, 2, 3), keepdims=True)  # biased, BN training mode
    g = gamma.reshape(1, -1, 1, 1)
    b = beta.reshape(1, -1, 1, 1)
    return (conv - mean) / jnp.sqrt(var + eps) * g + b


if __name__ == "__main__":
    def _run_case(idx, N, Cin, H, W, Cout, Ksz, stride, padding, dilation):
        key = jax.random.fold_in(jax.random.PRNGKey(0), idx)
        kx, kw, kg, kb = jax.random.split(key, 4)
        x = jax.random.normal(kx, (N, Cin, H, W), dtype=jnp.float32)
        weight = jax.random.normal(kw, (Cout, Cin, Ksz, Ksz), dtype=jnp.float32) * 0.1
        # PyTorch inits BN to gamma=1, beta=0; use random affine params to
        # exercise the full math deterministically (synthetic parameters).
        gamma = jax.random.normal(kg, (Cout,), dtype=jnp.float32) * 0.5 + 1.0
        beta = jax.random.normal(kb, (Cout,), dtype=jnp.float32) * 0.1

        out = basic_conv2d(x, weight, gamma, beta,
                           stride=stride, padding=padding, dilation=dilation)
        out = jax.block_until_ready(out)
        ref = _reference(x, weight, gamma, beta,
                         stride=stride, padding=padding, dilation=dilation,
                         eps=1e-5, mxu_dtype=jnp.bfloat16)
        Ho = (H + 2 * padding - dilation * (Ksz - 1) - 1) // stride + 1
        Wo = (W + 2 * padding - dilation * (Ksz - 1) - 1) // stride + 1
        assert out.shape == (N, Cout, Ho, Wo), out.shape
        err = float(jnp.abs(out - ref).max())
        assert jnp.allclose(out, ref, atol=2e-3, rtol=2e-3), (idx, err)

    # Case 0: BasicConv2d(4, 8, kernel_size=3, padding=1) — exercises the
    # low-arithmetic-intensity recompute path (no f32 conv intermediate).
    _run_case(0, N=2, Cin=4, H=16, W=16, Cout=8, Ksz=3,
              stride=1, padding=1, dilation=1)
    # Case 1: larger Cin — exercises the store path (f32 conv intermediate,
    # BN affine fused into the XLA epilogue).
    _run_case(1, N=1, Cin=32, H=8, W=8, Cout=8, Ksz=3,
              stride=1, padding=1, dilation=1)

    print("KERNEL_OK")
</pallas_src>

<mosaic_0001>
module attributes {stable_mosaic.version = 11 : i64} {
  func.func @_stats_kernel(%arg0: i32, %arg1: memref<256x128xbf16, #tpu.memory_space<vmem>>, %arg2: memref<128x128xbf16, #tpu.memory_space<vmem>>, %arg3: memref<1x2x128xf32, #tpu.memory_space<vmem>>) attributes {dimension_semantics = [#tpu.dimension_semantics<parallel>], iteration_bounds = array<i64: 2>, scalar_prefetch = 0 : i64, scratch_operands = 0 : i64, tpu.core_type = #tpu.core_type<tc>, window_params = [{transform_indices = @transform_0, window_bounds = array<i64: 256, 128>}, {pipeline_mode = #tpu.pipeline_mode<synchronous>, transform_indices = @transform_1, window_bounds = array<i64: 128, 128>}, {transform_indices = @transform_2, window_bounds = array<i64: 1, 2, 128>}]} {
    %c0 = arith.constant 0 : index
    %c0_0 = arith.constant 0 : index
    %0 = vector.load %arg1[%c0, %c0_0] : memref<256x128xbf16, #tpu.memory_space<vmem>>, vector<256x128xbf16>
    %c0_1 = arith.constant 0 : index
    %c0_2 = arith.constant 0 : index
    %1 = vector.load %arg2[%c0_1, %c0_2] : memref<128x128xbf16, #tpu.memory_space<vmem>>, vector<128x128xbf16>
    %cst = arith.constant dense<0.000000e+00> : vector<256x128xf32>
    %2 = tpu.matmul %0, %1, %cst {dimension_numbers = #tpu.dot_dimension_numbers<[1], [0], [0], [1], [0, 0, 1, 1], [], []>} : vector<256x128xbf16>, vector<128x128xbf16>, vector<256x128xf32> -> vector<256x128xf32>
    %cst_3 = arith.constant dense<0.000000e+00> : vector<128xf32>
    %3 = vector.multi_reduction <add>, %2, %cst_3 [0] : vector<256x128xf32> to vector<128xf32>
    %4 = vector.shape_cast %3 : vector<128xf32> to vector<1x128xf32>
    %c0_4 = arith.constant 0 : index
    %c0_5 = arith.constant 0 : index
    %c0_6 = arith.constant 0 : index
    %5 = vector.load %arg3[%c0_4, %c0_5, %c0_6] : memref<1x2x128xf32, #tpu.memory_space<vmem>>, vector<1x1x128xf32>
    %6 = vector.shape_cast %5 : vector<1x1x128xf32> to vector<1x128xf32>
    %7 = vector.shape_cast %4 : vector<1x128xf32> to vector<1x1x128xf32>
    tpu.vector_store %arg3[%c0_4, %c0_5, %c0_6], %7 {strides = array<i32>} : memref<1x2x128xf32, #tpu.memory_space<vmem>>, vector<1x1x128xf32>,
    %8 = arith.mulf %2, %2 : vector<256x128xf32>
    %cst_7 = arith.constant dense<0.000000e+00> : vector<128xf32>
    %9 = vector.multi_reduction <add>, %8, %cst_7 [0] : vector<256x128xf32> to vector<128xf32>
    %10 = vector.shape_cast %9 : vector<128xf32> to vector<1x128xf32>
    %c0_8 = arith.constant 0 : index
    %c1 = arith.constant 1 : index
    %c0_9 = arith.constant 0 : index
    %11 = vector.load %arg3[%c0_8, %c1, %c0_9] : memref<1x2x128xf32, #tpu.memory_space<vmem>>, vector<1x1x128xf32>
    %12 = vector.shape_cast %11 : vector<1x1x128xf32> to vector<1x128xf32>
    %13 = vector.shape_cast %10 : vector<1x128xf32> to vector<1x1x128xf32>
    tpu.vector_store %arg3[%c0_8, %c1, %c0_9], %13 {strides = array<i32>} : memref<1x2x128xf32, #tpu.memory_space<vmem>>, vector<1x1x128xf32>,
    return
  }
  func.func @transform_0(%arg0: i32) -> (i32, i32) {
    %c0_i32 = arith.constant 0 : i32
    %c0_i32_0 = arith.constant 0 : i32
    return %arg0, %c0_i32 : i32, i32
  }
  func.func @transform_1(%arg0: i32) -> (i32, i32) {
    %c0_i32 = arith.constant 0 : i32
    %c0_i32_0 = arith.constant 0 : i32
    %c0_i32_1 = arith.constant 0 : i32
    return %c0_i32, %c0_i32_0 : i32, i32
  }
  func.func @transform_2(%arg0: i32) -> (i32, i32, i32) {
    %c0_i32 = arith.constant 0 : i32
    %c0_i32_0 = arith.constant 0 : i32
    %c0_i32_1 = arith.constant 0 : i32
    return %arg0, %c0_i32, %c0_i32_0 : i32, i32, i32
  }
}

</mosaic_0001>

<bundles_post_ra>
// kernel: tpu_custom_call.1
= control target key start
LH: loop header
LB: loop body
LE: loop exit
PB: predicated region body
PF: predicated region fallthrough
CT: control target
= control target key end

     0   :  { %7 = vsyncpa [#allocation3], 0  ;;  %s1297_s0 = inlined_call_operand.hbm [shape: bf16[512,128], index: 0, kind: input, shape index: {}]   ;;  %s1298_s1 = inlined_call_operand.hbm [shape: bf16[128,128], index: 1, kind: input, shape index: {}]   ;;  %s1299_s2 = inlined_call_operand.hbm [shape: f32[2,2,128], index: 2, kind: output, shape index: {}]  }
   0x1   :  { %9 = vsyncpa [#allocation3 + $0x1], 0 }
   0x2   :  { %10 = vsyncpa [#allocation6], 0 }
   0x3   :  { %11 = vsyncpa [#allocation4], 0 }
   0x4   :  { %13 = vsyncpa [#allocation4 + $0x1], 0  ;;  %s1089_s9 = smov 0   ;;  %s1091_s10 = smov 0  }
   0x5   :  { %s1093_s11 = smov 0   ;;  %s1095_s12 = smov 0  }
   0x6 LB: > { %s1110_s13 = sadd.s32 4294967295, %s1067_s12   ;;  %s734_s14 = sadd.s32 4294967294, %s1067_s12   ;;  %s1067_s12 = sphi %s1095_s12, %s1321_s12   ;;  %s1063_s11 = sphi %s1093_s11, %s1320_s11   ;;  %s1059_s10 = sphi %s1091_s10, %s1319_s10   ;;  %s1055_s9 = sphi %s1089_s9, %s1318_s9  }
   0x7   : > { %p39_p0 = scmp.ne.s32.totalorder %s1059_s10, %s1055_s9  ;;  %p1300_p1 = scmp.eq.s32.totalorder %s1110_s13, 0 }
   0x8   : > { %p90_p3 = scmp.eq.s32.totalorder %s734_s14, 1  ;;  %p735_p5 = scmp.ge.s32.totalorder %s1067_s12, 1 }
   0x9   : > { %p1119_p4 = por %p1300_p1, %p39_p0  ;;  %p97_p7 = scmp.lt.s32.totalorder %s1067_s12, 3 }
   0xa   : > { %p1124_p6 = por %p90_p3, %p39_p0  ;;  %s1069_s18 = smov [#allocation5]  }
   0xb   : > { %s1304_s15 = scalar_select %p1119_p4, 1, 0 }
   0xc   : > { %s1305_s16 = scalar_select %p1124_p6, 1, 0 }
   0xd   : > { %p1129_p8 = pnand %p735_p5, %p97_p7  ;;  %s109_s19 = sshll.u32 %s1069_s18, 4  ;;  %s110_s19 = int_to_ptr.vmem [resolvable:$true] %s109_s19 }
   0xe   : > { %s1143_s21 = sadd.s32 1, %s1067_s12   ;;  %s26_s22 = sadd.s32 1, %s1063_s11 }
   0xf   : > { %s1306_s17 = scalar_select %p1129_p8, 1, 0 }
  0x10   : > { %p870_p9 = pneg %p1129_p8  ;;  %s23_s23 = ssub.s32 %s1067_s12, %s1143_s21 }
  0x11   : > { %s956_s24 = scalar_lea.vmem %s110_s19, 1024  ;;  %p964_p5 = scmp.lt.s32.totalorder %s110_s19, %s110_s19 }
  0x12   : > { %p1138_p11 = pnand %p870_p9, %p1300_p1  ;;  %p957_p13 = scmp.ne.s32.totalorder %s110_s19, %s956_s24 }
  0x13   : > { %p965_p7 = scmp.lt.s32.totalorder %s956_s24, %s956_s24 }
  0x14   : > { %p947_p12 = pneg %p1138_p11 }
  0x15   : > { %p966_p10 = por %p965_p7, %p964_p5 }
  0x16   : > { %p959_p0 = pnand %p957_p13, %p947_p12 }
  0x18   : > { %p960_p3 = pneg %p959_p0 }
  0x1a   : > { %p967_p2 = pnand %p966_p10, %p960_p3 }
  0x1c   : > { %970 = shalt.err (!%p967_p2)
}
  0x1d   : > { %s1070_s25 = smov 64   ;;  %s1071_s26 = smov 4  }
  0x1e   : > { %873 = dma.hbm_to_vmem [thread:$0]  (!%p1138_p11), %s1298_s1, 1024, %s110_s19, [#allocation6], %s1070_s25, %s1070_s25, %s1071_s26  }
  0x1f   : > { %p24_p2 = scmp.eq.s32.totalorder %s23_s23, 0  ;;  %p33_p9 = scmp.ne.s32.totalorder %s1063_s11, %s1059_s10 }
  0x20   : > { %p34_p10 = scmp.eq.s32.totalorder %s1067_s12, 0  ;;  %p883_p12 = scmp.lt.s32.totalorder %s1067_s12, 2 }
  0x21   : > { %s1163_s29 = scalar_select %p24_p2, %s1063_s11, %s26_s22  }
  0x22   : > { %p35_p13 = por %p34_p10, %p33_p9  ;;  %p1308_p0 = scmp.eq.s32.totalorder %s1110_s13, 1 }
  0x23   : > { %s123_s3 = sand.u32 1, %s1063_s11   ;;  %s773_s4 = sshll.u32 %s1067_s12, 11 }
  0x24   : > { %p1167_p3 = por %p1308_p0, %p33_p9  ;;  %s738_s5 = sshll.u32 %s123_s3, 7 }
  0x25   : > { %s1176_s8 = scalar_lea.hbm %s1297_s0, %s773_s4  ;;  %s127_s14 = scalar_lea.vmem [#allocation2], %s738_s5 }
  0x26   : > { %s1309_s30 = scalar_select %p1167_p3, 1, 0 }
  0x27   : > { %s134_s18 = sshll.u32 %s127_s14, 4  ;;  %p1178_p11 = pnand %p883_p12, %p35_p13  ;;  %s1182_s18 = int_to_ptr.vmem [resolvable:$true] %s134_s18 }
  0x28   : > { %s1184_s20 = scalar_lea.sflag [#allocation3], %s123_s3  ;;  %s971_s22 = scalar_lea.hbm %s1176_s8, 2048 }
  0x29   : > { %p972_p5 = scmp.ne.s32.totalorder %s1176_s8, %s971_s22  ;;  %p973_p7 = pneg %p1178_p11 }
  0x2a   : > { %s976_s27 = scalar_lea.hbm %s1297_s0, 4096  ;;  %p977_p10 = scmp.lt.s32.totalorder %s1176_s8, %s1297_s0 }
  0x2b   : > { %p974_p2 = pnand %p973_p7, %p972_p5  ;;  %p978_p12 = scmp.lt.s32.totalorder %s976_s27, %s971_s22 }
  0x2d   : > { %p975_p9 = pneg %p974_p2  ;;  %p979_p13 = por %p978_p12, %p977_p10 }
  0x2f   : > { %p980_p0 = pnand %p979_p13, %p975_p9 }
  0x31   : > { %983 = shalt.err (!%p980_p0)
}
  0x32   : > { %s984_s3 = scalar_lea.vmem %s1182_s18, 2048  ;;  %s1072_s5 = smov [#allocation2]  }
  0x33   : > { %p985_p1 = scmp.ne.s32.totalorder %s1182_s18, %s984_s3  ;;  %s989_s6 = sshll.u32 %s1072_s5, 4  ;;  %s990_s6 = int_to_ptr.vmem [resolvable:$false] %s989_s6 }
  0x34   : > { %s991_s7 = scalar_lea.vmem %s990_s6, 4096  ;;  %p992_p2 = scmp.lt.s32.totalorder %s1182_s18, %s990_s6 }
  0x35   : > { %p987_p6 = pnand %p985_p1, %p973_p7  ;;  %p993_p3 = scmp.lt.s32.totalorder %s991_s7, %s984_s3 }
  0x37   : > { %p988_p5 = pneg %p987_p6  ;;  %p994_p4 = por %p993_p3, %p992_p2 }
  0x39   : > { %p995_p8 = pnand %p994_p4, %p988_p5 }
  0x3b   : > { %998 = shalt.err (!%p995_p8)
}
  0x3c   : > { %877 = dma.hbm_to_vmem [thread:$0]  (!%p1178_p11), %s1176_s8, 2048, %s1182_s18, %s1184_s20, %s1070_s25, %s1070_s25, %s1071_s26  }
  0x3d   : > { %p1311_p1 = scmp.ne.s32.totalorder %s1306_s17, 0 }
  0x3e   : > { %s1211_s14 = sand.u32 (!%p1311_p1), 1, %s1059_s10   ;;  %p1312_p4 = scmp.ne.s32.totalorder (!%p1311_p1), %s1304_s15, 0 }
  0x3f   : > { %146 = sbr.rel (%p1311_p1) target bundleno = 393 (0x189), region = 28  ;;  %s742_s22 = sshll.u32 (!%p1311_p1), %s1211_s14, 7 }
  0x40   : > { %s149_s23 = scalar_lea.sflag (!%p1311_p1), [#allocation3], %s1211_s14  ;;  %s1215_s24 = scalar_lea.vmem (!%p1311_p1), [#allocation2], %s742_s22 }
  0x44   : > { %1042 = dma.done.wait (%p1312_p4), %s149_s23, 2048  }
  0x45   : > { %1044 = vsyncadd (%p1312_p4), %s149_s23, 4294965248  ;;  %p1313_p6 = scmp.eq.s32.totalorder %s1110_s13, 0 }
  0x47   : > { %1046 = dma.done.wait (%p1313_p6), [#allocation6], 1024   ;;  %p1314_p8 = pmov %p1313_p6 }
  0x48   : > { %v921_v0 = vld [vmem:[#allocation5 + $0x38] sm:$0xff]   ;;  %v922_v1 = vld [vmem:[#allocation5 + $0x30] sm:$0xff]   ;;  %v923_v2 = vld [vmem:[#allocation5 + $0x28] sm:$0xff]   ;;  %s744_s15 = sshll.u32 %s1211_s14, 1  ;;  %s770_s17 = sshll.u32 %s1110_s13, 5 }
  0x49   : > { %1048 = vsyncadd (%p1314_p8), [#allocation6], 4294966272  ;;  %798 = vmatprep.subr.bf16.mxu0 %v921_v0  ;;  %846 = vmatprep.subr.bf16.mxu1 %v921_v0  ;;  %v924_v3 = vld [vmem:[#allocation5 + $0x20] sm:$0xff]   ;;  %v925_v5 = vld [vmem:[#allocation5 + $0x18] sm:$0xff]   ;;  %s176_s25 = scalar_lea.vmem [#allocation7], %s744_s15  ;;  %s652_s19 = scalar_lea.hbm %s1299_s2, %s770_s17 }
  0x4a   : > { %799 = vmatpush3.bf16.msra.mxu0 %v921_v0  ;;  %854 = vmatpush3.bf16.msra.mxu1 %v921_v0  ;;  %v929_v4 = vld [vmem:[%s1215_s24] sm:$0xff]   ;;  %v926_v6 = vld [vmem:[#allocation5 + $0x10] sm:$0xff]   ;;  %v927_v8 = vld [vmem:[#allocation5 + $0x8] sm:$0xff]   ;;  %s654_s26 = sshll.u32 %s176_s25, 4  ;;  %s641_s20 = scalar_lea.sflag [#allocation4], %s1211_s14  ;;  %s655_s26 = int_to_ptr.vmem [resolvable:$true] %s654_s26 }
  0x4b   : > { %800 = vmatprep.subr.bf16.mxu0 %v922_v1  ;;  %847 = vmatprep.subr.bf16.mxu1 %v922_v1  ;;  %v937_v7 = vld [vmem:[%s1215_s24 + $0x40] sm:$0xff]   ;;  %v930_v10 = vld [vmem:[%s1215_s24 + $0x8] sm:$0xff]   ;;  %v931_v12 = vld [vmem:[%s1215_s24 + $0x10] sm:$0xff]   ;;  %s999_s27 = scalar_lea.vmem %s655_s26, 32  ;;  %p1315_p11 = scmp.ne.s32.totalorder %s1309_s30, 0 }
  0x4c   : > { %814 = vmatprep.mubr.bf16.mxu0 %v929_v4  ;;  %830 = vmatprep.mubr.bf16.mxu1 %v937_v7  ;;  %v928_v9 = vld [vmem:[#allocation5] sm:$0xff]   ;;  %v938_v11 = vld [vmem:[%s1215_s24 + $0x48] sm:$0xff]   ;;  %v939_v13 = vld [vmem:[%s1215_s24 + $0x50] sm:$0xff]   ;;  %p1000_p3 = scmp.ne.s32.totalorder %s655_s26, %s999_s27  ;;  %s1073_s28 = smov [#allocation7]  }
  0x4d   : > { %v932_v14 = vld [vmem:[%s1215_s24 + $0x18] sm:$0xff]   ;;  %v933_v16 = vld [vmem:[%s1215_s24 + $0x20] sm:$0xff]   ;;  %v934_v18 = vld [vmem:[%s1215_s24 + $0x28] sm:$0xff]   ;;  %s1003_s13 = sshll.u32 %s1073_s28, 4  ;;  %s1004_s13 = int_to_ptr.vmem [resolvable:$false] %s1003_s13 }
  0x4e   : > { %801 = vmatpush3.bf16.msra.mxu0 %v922_v1  ;;  %855 = vmatpush3.bf16.msra.mxu1 %v922_v1  ;;  %v940_v15 = vld [vmem:[%s1215_s24 + $0x58] sm:$0xff]   ;;  %v941_v17 = vld [vmem:[%s1215_s24 + $0x60] sm:$0xff]   ;;  %v942_v19 = vld [vmem:[%s1215_s24 + $0x68] sm:$0xff]   ;;  %p1001_p7 = pnand %p1000_p3, %p1315_p11  ;;  %s1005_s4 = scalar_lea.vmem %s1004_s13, 64 }
  0x4f   : > { %802 = vmatprep.subr.bf16.mxu0 %v923_v2  ;;  %848 = vmatprep.subr.bf16.mxu1 %v923_v2  ;;  %v935_v20 = vld [vmem:[%s1215_s24 + $0x30] sm:$0xff]   ;;  %v936_v22 = vld [vmem:[%s1215_s24 + $0x38] sm:$0xff]   ;;  %p1006_p10 = scmp.lt.s32.totalorder %s655_s26, %s1004_s13  ;;  %p1007_p12 = scmp.lt.s32.totalorder %s1005_s4, %s999_s27 }
  0x50   : > { %v943_v21 = vld [vmem:[%s1215_s24 + $0x70] sm:$0xff]   ;;  %v944_v23 = vld [vmem:[%s1215_s24 + $0x78] sm:$0xff]   ;;  %p1002_p9 = pneg %p1001_p7 }
  0x51   : > { %p1008_p13 = por %p1007_p12, %p1006_p10 }
  0x52   : > { %803 = vmatpush3.bf16.msra.mxu0 %v923_v2  ;;  %856 = vmatpush3.bf16.msra.mxu1 %v923_v2 }
  0x53   : > { %804 = vmatprep.subr.bf16.mxu0 %v924_v3  ;;  %849 = vmatprep.subr.bf16.mxu1 %v924_v3  ;;  %p1009_p0 = pnand %p1008_p13, %p1002_p9 }
  0x56   : > { %805 = vmatpush3.bf16.msra.mxu0 %v924_v3  ;;  %857 = vmatpush3.bf16.msra.mxu1 %v924_v3 }
  0x57   : > { %806 = vmatprep.subr.bf16.mxu0 %v925_v5  ;;  %850 = vmatprep.subr.bf16.mxu1 %v925_v5 }
  0x5a   : > { %807 = vmatpush3.bf16.msra.mxu0 %v925_v5  ;;  %858 = vmatpush3.bf16.msra.mxu1 %v925_v5 }
  0x5b   : > { %808 = vmatprep.subr.bf16.mxu0 %v926_v6  ;;  %851 = vmatprep.subr.bf16.mxu1 %v926_v6 }
  0x5e   : > { %809 = vmatpush3.bf16.msra.mxu0 %v926_v6  ;;  %859 = vmatpush3.bf16.msra.mxu1 %v926_v6 }
  0x5f   : > { %810 = vmatprep.subr.bf16.mxu0 %v927_v8  ;;  %852 = vmatprep.subr.bf16.mxu1 %v927_v8 }
  0x62   : > { %811 = vmatpush3.bf16.msra.mxu0 %v927_v8  ;;  %860 = vmatpush3.bf16.msra.mxu1 %v927_v8 }
  0x63   : > { %812 = vmatprep.subr.bf16.mxu0 %v928_v9  ;;  %853 = vmatprep.subr.bf16.mxu1 %v928_v9 }
  0x66   : > { %813 = vmatpush3.bf16.msra.mxu0 %v928_v9  ;;  %861 = vmatpush3.bf16.msra.mxu1 %v928_v9 }
  0x69   : > { %815 = vmatmul.mubr.bf16.vlgmr.msra.gmra.mxu0 %v930_v10  ;;  %831 = vmatmul.mubr.bf16.vlgmr.msra.gmra.mxu1 %v938_v11 }
  0x6a   : > { %818 = vmatprep.mubr.bf16.mxu0 %v931_v12  ;;  %834 = vmatprep.mubr.bf16.mxu1 %v939_v13 }
  0x71   : > { %819 = vmatmul.mubr.bf16.gmra.mxu0 %v932_v14  ;;  %835 = vmatmul.mubr.bf16.gmra.mxu1 %v940_v15 }
  0x72   : > { %822 = vmatprep.mubr.bf16.mxu0 %v933_v16  ;;  %838 = vmatprep.mubr.bf16.mxu1 %v941_v17 }
  0x79   : > { %823 = vmatmul.mubr.bf16.gmra.mxu0 %v934_v18  ;;  %839 = vmatmul.mubr.bf16.gmra.mxu1 %v942_v19 }
  0x7a   : > { %826 = vmatprep.mubr.bf16.mxu0 %v935_v20  ;;  %842 = vmatprep.mubr.bf16.mxu1 %v943_v21 }
  0x81   : > { %827 = vmatmul.mubr.bf16.gmra.mxu0 %v936_v22  ;;  %843 = vmatmul.mubr.bf16.gmra.mxu1 %v944_v23 }
 0x129   : > { %v816_v24 = vpop.f32.mrf.mxu0  ;;  %v1241_v25 = vpop.f32.mrf.mxu1 }
 0x12a   : > { %v572_v35 = vmul.f32 %v816_v24, %v816_v24 }
 0x12b   : > { %v405_v26 = vpop.f32.mrf.mxu0  ;;  %v1243_v28 = vpop.f32.mrf.mxu1 }
 0x12c   : > { %v570_v30 = vmul.f32 %v405_v26, %v405_v26 }
 0x12d   : > { %v817_v27 = vpop.f32.mrf.mxu0  ;;  %v1245_v34 = vpop.f32.mrf.mxu1 }
 0x12e   : > { %v573_v39 = vmul.f32 %v817_v27, %v817_v27 }
 0x12f   : > { %v408_v29 = vpop.f32.mrf.mxu0  ;;  %v472_v43 = vpop.f32.mrf.mxu1 }
 0x130   : > { %v532_v31 = vadd.f32 %v408_v29, %v405_v26  ;;  %v571_v32 = vmul.f32 %v408_v29, %v408_v29 }
 0x131   : > { %v820_v33 = vpop.f32.mrf.mxu0  ;;  %v1247_v52 = vpop.f32.mrf.mxu1 }
 0x132   : > { %v533_v36 = vadd.f32 %v816_v24, %v532_v31  ;;  %v602_v37 = vadd.f32 %v571_v32, %v570_v30  ;;  %v576_v53 = vmul.f32 %v820_v33, %v820_v33 }
 0x133   : > { %v421_v38 = vpop.f32.mrf.mxu0  ;;  %v485_v61 = vpop.f32.mrf.mxu1 }
 0x134   : > { %v603_v40 = vadd.f32 %v602_v37, %v572_v35  ;;  %v534_v41 = vadd.f32 %v817_v27, %v533_v36  ;;  %v574_v45 = vmul.f32 %v421_v38, %v421_v38 }
 0x135   : > { %v821_v42 = vpop.f32.mrf.mxu0  ;;  %v837_v6 = vpop.f32.mrf.mxu1 }
 0x136   : > { %v535_v44 = vadd.f32 %v534_v41, %v421_v38  ;;  %v604_v46 = vadd.f32 %v603_v40, %v573_v39  ;;  %v577_v57 = vmul.f32 %v821_v42, %v821_v42  ;;  %v587_v38 = vmul.f32 %v472_v43, %v472_v43 }
 0x137   : > { %v424_v47 = vpop.f32.mrf.mxu0  ;;  %v488_v15 = vpop.f32.mrf.mxu1  ;;  %v588_v41 = vmul.f32 %v1241_v25, %v1241_v25 }
 0x138   : > { %v605_v48 = vadd.f32 %v604_v46, %v574_v45  ;;  %v536_v49 = vadd.f32 %v535_v44, %v424_v47  ;;  %v575_v50 = vmul.f32 %v424_v47, %v424_v47  ;;  %v589_v45 = vmul.f32 %v1245_v34, %v1245_v34 }
 0x139   : > { %v824_v51 = vpop.f32.mrf.mxu0  ;;  %v840_v23 = vpop.f32.mrf.mxu1 }
 0x13a   : > { %v537_v54 = vadd.f32 %v820_v33, %v536_v49  ;;  %v606_v55 = vadd.f32 %v605_v48, %v575_v50  ;;  %v580_v7 = vmul.f32 %v824_v51, %v824_v51  ;;  %v586_v33 = vmul.f32 %v1243_v28, %v1243_v28 }
 0x13b   : > { %v437_v56 = vpop.f32.mrf.mxu0  ;;  %v501_v32 = vpop.f32.mrf.mxu1  ;;  %v590_v50 = vmul.f32 %v485_v61, %v485_v61 }
 0x13c   : > { %v607_v58 = vadd.f32 %v606_v55, %v576_v53  ;;  %v538_v59 = vadd.f32 %v821_v42, %v537_v54  ;;  %v578_v63 = vmul.f32 %v437_v56, %v437_v56  ;;  %v591_v53 = vmul.f32 %v488_v15, %v488_v15 }
 0x13d   : > { %v825_v60 = vpop.f32.mrf.mxu0  ;;  %v841_v40 = vpop.f32.mrf.mxu1  ;;  %v592_v55 = vmul.f32 %v1247_v52, %v1247_v52 }
 0x13e   : > { %v539_v62 = vadd.f32 %v538_v59, %v437_v56  ;;  %v608_v0 = vadd.f32 %v607_v58, %v577_v57  ;;  %v581_v11 = vmul.f32 %v825_v60, %v825_v60  ;;  %v593_v57 = vmul.f32 %v837_v6, %v837_v6 }
 0x13f   : > { %v440_v1 = vpop.f32.mrf.mxu0  ;;  %v504_v48 = vpop.f32.mrf.mxu1 }
 0x140   : > { %v609_v2 = vadd.f32 %v608_v0, %v578_v63  ;;  %v540_v3 = vadd.f32 %v539_v62, %v440_v1  ;;  %v579_v4 = vmul.f32 %v440_v1, %v440_v1  ;;  %v595_v1 = vmul.f32 %v504_v48, %v504_v48 }
 0x141   : > { %v828_v5 = vpop.f32.mrf.mxu0  ;;  %v844_v54 = vpop.f32.mrf.mxu1 }
 0x142   : > { %v541_v8 = vadd.f32 %v824_v51, %v540_v3  ;;  %v610_v9 = vadd.f32 %v609_v2, %v579_v4  ;;  %v584_v24 = vmul.f32 %v828_v5, %v828_v5  ;;  %v596_v3 = vmul.f32 %v840_v23, %v840_v23 }
 0x143   : > { %v453_v10 = vpop.f32.mrf.mxu0 }
 0x144   : > { %v611_v12 = vadd.f32 %v610_v9, %v580_v7  ;;  %v542_v13 = vadd.f32 %v825_v60, %v541_v8  ;;  %v582_v17 = vmul.f32 %v453_v10, %v453_v10  ;;  %v517_v60 = vpop.f32.mrf.mxu1  ;;  %v597_v7 = vmul.f32 %v841_v40, %v841_v40 }
 0x145   : > { %v829_v14 = vpop.f32.mrf.mxu0 }
 0x146   : > { %v543_v16 = vadd.f32 %v542_v13, %v453_v10  ;;  %v612_v18 = vadd.f32 %v611_v12, %v581_v11  ;;  %v585_v29 = vmul.f32 %v829_v14, %v829_v14  ;;  %v845_v2 = vpop.f32.mrf.mxu1  ;;  %v598_v11 = vmul.f32 %v517_v60, %v517_v60 }
 0x147   : > { %v456_v19 = vpop.f32.mrf.mxu0 }
 0x148   : > { %v613_v20 = vadd.f32 %v612_v18, %v582_v17  ;;  %v544_v21 = vadd.f32 %v543_v16, %v456_v19  ;;  %v583_v22 = vmul.f32 %v456_v19, %v456_v19  ;;  %v520_v10 = vpop.f32.mrf.mxu1  ;;  %v601_v18 = vmul.f32 %v845_v2, %v845_v2 }
 0x14a   : > { %v545_v26 = vadd.f32 %v828_v5, %v544_v21  ;;  %v614_v27 = vadd.f32 %v613_v20, %v583_v22 }
 0x14c   : > { %v546_v30 = vadd.f32 %v829_v14, %v545_v26  ;;  %v615_v31 = vadd.f32 %v614_v27, %v584_v24  ;;  %v599_v14 = vmul.f32 %v520_v10, %v520_v10 }
 0x14e   : > { %v616_v35 = vadd.f32 %v615_v31, %v585_v29  ;;  %v547_v36 = vadd.f32 %v546_v30, %v1243_v28 }
 0x150   : > { %v548_v37 = vadd.f32 %v547_v36, %v472_v43  ;;  %v617_v39 = vadd.f32 %v616_v35, %v586_v33 }
 0x152   : > { %v549_v42 = vadd.f32 %v1241_v25, %v548_v37  ;;  %v618_v44 = vadd.f32 %v617_v39, %v587_v38 }
 0x154   : > { %v619_v46 = vadd.f32 %v618_v44, %v588_v41  ;;  %v550_v47 = vadd.f32 %v1245_v34, %v549_v42  ;;  %v594_v34 = vmul.f32 %v501_v32, %v501_v32 }
 0x156   : > { %v551_v49 = vadd.f32 %v550_v47, %v485_v61  ;;  %v620_v28 = vadd.f32 %v619_v46, %v589_v45 }
 0x158   : > { %v621_v51 = vadd.f32 %v620_v28, %v590_v50  ;;  %v552_v43 = vadd.f32 %v551_v49, %v488_v15  ;;  %v600_v15 = vmul.f32 %v844_v54, %v844_v54 }
 0x15a   : > { %v553_v25 = vadd.f32 %v1247_v52, %v552_v43  ;;  %v622_v56 = vadd.f32 %v621_v51, %v591_v53 }
 0x15c   : > { %v623_v58 = vadd.f32 %v622_v56, %v592_v55  ;;  %v554_v59 = vadd.f32 %v837_v6, %v553_v25 }
 0x15e   : > { %v555_v62 = vadd.f32 %v554_v59, %v501_v32  ;;  %v624_v63 = vadd.f32 %v623_v58, %v593_v57 }
 0x160   : > { %v625_v0 = vadd.f32 %v624_v63, %v594_v34  ;;  %v556_v61 = vadd.f32 %v555_v62, %v504_v48 }
 0x162   : > { %v557_v4 = vadd.f32 %v840_v23, %v556_v61  ;;  %v626_v5 = vadd.f32 %v625_v0, %v595_v1 }
 0x164   : > { %v627_v8 = vadd.f32 %v626_v5, %v596_v3  ;;  %v558_v9 = vadd.f32 %v841_v40, %v557_v4 }
 0x166   : > { %v559_v52 = vadd.f32 %v558_v9, %v517_v60  ;;  %v628_v12 = vadd.f32 %v627_v8, %v597_v7 }
 0x168   : > { %v629_v6 = vadd.f32 %v628_v12, %v598_v11  ;;  %v560_v13 = vadd.f32 %v559_v52, %v520_v10 }
 0x16a   : > { %v561_v16 = vadd.f32 %v844_v54, %v560_v13  ;;  %v630_v17 = vadd.f32 %v629_v6, %v599_v14 }
 0x16c   : > { %v562_v19 = vadd.f32 %v845_v2, %v561_v16  ;;  %v631_v20 = vadd.f32 %v630_v17, %v600_v15 }
 0x16e   : > { %v563_v21 = vrot.slane %v562_v19, 4  ;;  %v632_v22 = vadd.f32 %v631_v20, %v601_v18 }
 0x170   : > { %v564_v23 = vadd.f32 %v563_v21, %v562_v19  ;;  %v633_v24 = vrot.slane %v632_v22, 4 }
 0x172   : > { %v565_v26 = vrot.slane %v564_v23, 2  ;;  %v634_v27 = vadd.f32 %v633_v24, %v632_v22 }
 0x174   : > { %v566_v29 = vadd.f32 %v565_v26, %v564_v23  ;;  %v635_v30 = vrot.slane %v634_v27, 2 }
 0x176   : > { %v567_v31 = vrot.slane %v566_v29, 1  ;;  %v636_v32 = vadd.f32 %v635_v30, %v634_v27 }
 0x178   : > { %v568_v33 = vadd.f32 %v567_v31, %v566_v29  ;;  %v637_v35 = vrot.slane %v636_v32, 1 }
 0x17a   : > { %v638_v36 = vadd.f32 %v637_v35, %v636_v32  ;;  %569 = vst [vmem:[%s176_s25] sm:$0x1] %v568_v33 }
 0x17c   : > { %639 = vst [vmem:[%s176_s25 + $0x1] sm:$0x1] %v638_v36 }
 0x17d   : > { %1012 = shalt.err (!%p1009_p0)
}
 0x17e   : > { %s1013_s3 = scalar_lea.hbm %s652_s19, 32  ;;  %s1017_s7 = scalar_lea.hbm %s1299_s2, 64 }
 0x17f   : > { %p1014_p5 = scmp.ne.s32.totalorder %s652_s19, %s1013_s3  ;;  %p1018_p4 = scmp.lt.s32.totalorder %s652_s19, %s1299_s2 }
 0x180   : > { %p1019_p6 = scmp.lt.s32.totalorder %s1017_s7, %s1013_s3 }
 0x181   : > { %p1015_p2 = pnand %p1014_p5, %p1315_p11 }
 0x182   : > { %p1020_p8 = por %p1019_p6, %p1018_p4 }
 0x183   : > { %p1016_p1 = pneg %p1015_p2 }
 0x185   : > { %p1021_p3 = pnand %p1020_p8, %p1016_p1 }
 0x187   : > { %1024 = shalt.err (!%p1021_p3)
}
 0x188   : > { %868 = dma.vmem_to_hbm [thread:$0]  (%p1315_p11), %s655_s26, 32, %s652_s19, %s641_s20  }
 0x189 PF: > { %s666_s23 = sand.u32 1, %s1055_s9   ;;  %p1316_p7 = scmp.ne.s32.totalorder %s1305_s16, 0 }
 0x18a   : > { %p1317_p9 = scmp.ge.s32.totalorder %s1067_s12, 2  ;;  %s667_s24 = scalar_lea.sflag [#allocation4], %s666_s23 }
 0x18c   : > { %p879_p10 = pnand %p1317_p9, %p1316_p7 }
 0x18e   : > { %p880_p12 = pneg %p879_p10 }
 0x190   : > { %1050 = dma.done.wait (%p880_p12), %s667_s24, 32  }
 0x191   : > { %1052 = vsyncadd (%p880_p12), %s667_s24, 4294967264  ;;  %p16_p13 = scmp.ge.s32.totalorder %s1143_s21, 4   ;;  %s1318_s9 = smov %s1059_s10 }
 0x192   : > { %s1319_s10 = smov %s1063_s11  ;;  %s1320_s11 = smov %s1163_s29 }
 0x193   : > { %s1321_s12 = smov %s1143_s21  ;;  %18 = sbr.rel (!%p16_p13) target bundleno = 6 (0x6), region = 77 }
 0x198   :  { %672 = vsyncpa [#allocation3], 1 }
 0x199   :  { %674 = vsyncpa [#allocation3 + $0x1], 1 }
 0x19a   :  { %675 = vsyncpa [#allocation6], 1 }
 0x19b   :  { %676 = vsyncpa [#allocation4], 1 }
 0x19c   :  { %678 = vsyncpa [#allocation4 + $0x1], 1 }

</bundles_post_ra>
